<compile_context>
chip_gen: v7x
topology: tpu7x:2x2x1
jax: 0.10.0
libtpu: 0.0.40
codegen_flags: <defaults>
</compile_context>

<pallas_src>
import functools

import jax
import jax.numpy as jnp
from jax.experimental import pallas as pl
from jax.experimental.pallas import tpu as pltpu


def _fused_mlp_kernel(*refs, num_hidden):
    """refs = (x_ref, w0, b0, w1, b1, ..., w_final, b_final, o_ref)."""
    x_ref, o_ref = refs[0], refs[-1]
    layer_refs = refs[1:-1]

    x = x_ref[...]
    # Hidden layers: MXU matmul + bias + ReLU, everything stays in vregs/VMEM.
    for i in range(num_hidden):
        w = layer_refs[2 * i][...]
        b = layer_refs[2 * i + 1][...]          # (1, out) broadcasts over batch
        x = jnp.maximum(
            jnp.dot(x, w, preferred_element_type=jnp.float32) + b, 0.0)
    # Final layer (no ReLU): (width, 1) weight, (1, 1) bias.
    w = layer_refs[2 * num_hidden][...]
    b = layer_refs[2 * num_hidden + 1][...]
    y = jnp.dot(x, w, preferred_element_type=jnp.float32) + b
    o_ref[...] = y.astype(o_ref.dtype)


def _round_up(x, m):
    return ((x + m - 1) // m) * m


def _pick_block_batch(batch, block_batch):
    """Tile-size policy (see module docstring)."""
    if batch <= min(block_batch, 1024):
        # Small batch: a single grid step; splitting only adds fixed overhead.
        return batch
    # Large batch: at least 2 grid steps (so both v7x TensorCores get work),
    # capped at block_batch and kept 8-row (sublane) aligned.
    return min(block_batch, _round_up(pl.cdiv(batch, 2), 8))


def relunet_forward(params, x, *, block_batch=4096):
    """Fused forward pass matching ReLUNet.forward. Returns (batch, 1)."""
    batch, num_inputs = x.shape
    num_hidden = len(params) - 1
    out_dim = params[-1][0].shape[1]            # == 1

    bb = _pick_block_batch(batch, block_batch)
    grid = (pl.cdiv(batch, bb),)

    flat_params = []
    in_specs = [pl.BlockSpec((bb, num_inputs), lambda i: (i, 0))]
    for w, b in params:
        flat_params.extend((w, b))
        # Weights/biases are tiny (~12 KB total at width=32): full-array
        # VMEM-resident blocks, identical for every grid step.
        in_specs.append(pl.BlockSpec(w.shape, lambda i: (0, 0)))
        in_specs.append(pl.BlockSpec(b.shape, lambda i: (0, 0)))
    out_spec = pl.BlockSpec((bb, out_dim), lambda i: (i, 0))

    itemsize = x.dtype.itemsize
    flops = sum(2 * batch * w.shape[0] * w.shape[1] for w, _ in params)
    bytes_accessed = (
        x.size * itemsize
        + sum(a.size * a.dtype.itemsize for a in flat_params)
        + batch * out_dim * itemsize)

    kernel = functools.partial(_fused_mlp_kernel, num_hidden=num_hidden)
    return pl.pallas_call(
        kernel,
        out_shape=jax.ShapeDtypeStruct((batch, out_dim), x.dtype),
        grid=grid,
        in_specs=in_specs,
        out_specs=out_spec,
        compiler_params=pltpu.CompilerParams(
            dimension_semantics=("parallel",),
            # Explicit limit keeps large tiles portable to v5e (16 MiB scoped
            # default) while staying under v7x's 64 MiB physical VMEM.
            vmem_limit_bytes=32 * 1024 * 1024),
        cost_estimate=pl.CostEstimate(
            flops=flops, transcendentals=0, bytes_accessed=bytes_accessed),
    )(x, *flat_params)


def init_relunet_params(key, num_inputs, num_layers, width):
    """Deterministic init mimicking PyTorch nn.Linear default U[-1/sqrt(fan_in), +].

    Weights stored transposed (in, out); biases as (1, out).  The final layer
    is the true (width, 1) / (1, 1) shape — no lane padding.
    """
    dims = ([(num_inputs, width)]
            + [(width, width)] * (num_layers - 1)
            + [(width, 1)])
    params = []
    for fan_in, fan_out in dims:
        key, kw, kb = jax.random.split(key, 3)
        bound = 1.0 / (fan_in ** 0.5)
        w_t = jax.random.uniform(kw, (fan_in, fan_out), jnp.float32, -bound, bound)
        b = jax.random.uniform(kb, (1, fan_out), jnp.float32, -bound, bound)
        params.append((w_t, b))
    return params


def relunet_forward_ref(params, x):
    """Pure-JAX reference: hidden [Linear -> ReLU], final Linear (no ReLU)."""
    *hidden, (w_f, b_f) = params
    for w, b in hidden:
        x = jnp.maximum(x @ w + b, 0.0)
    return x @ w_f + b_f


if __name__ == "__main__":
    # Shapes consistent with the module: num_inputs=16, num_layers=3, width=32.
    num_inputs, num_layers, width = 16, 3, 32

    key = jax.random.PRNGKey(0)
    key, kx = jax.random.split(key)
    params = init_relunet_params(key, num_inputs, num_layers, width)

    # Test 1: small batch -> single grid step.
    x = jax.random.normal(kx, (8, num_inputs), jnp.float32)
    out = jax.block_until_ready(jax.jit(relunet_forward)(params, x))
    ref = relunet_forward_ref(params, x)
    assert out.shape == (8, 1), out.shape
    assert jnp.allclose(out, ref, atol=1e-5, rtol=1e-5), "mismatch (batch=8)"

    # Test 2: multi-step grid with a non-divisible last tile (masked-store path),
    # per the review's correctness note.  batch=200, forced 64-row tiles -> 4 steps.
    key, kx2 = jax.random.split(key)
    x2 = jax.random.normal(kx2, (200, num_inputs), jnp.float32)
    fwd_tiled = jax.jit(functools.partial(relunet_forward, block_batch=64))
    out2 = jax.block_until_ready(fwd_tiled(params, x2))
    ref2 = relunet_forward_ref(params, x2)
    assert out2.shape == (200, 1), out2.shape
    assert jnp.allclose(out2, ref2, atol=1e-5, rtol=1e-5), "mismatch (batch=200)"

    print("KERNEL_OK")
</pallas_src>

<mosaic_0001>
module attributes {stable_mosaic.version = 11 : i64} {
  func.func @_fused_mlp_kernel(%arg0: i32, %arg1: memref<8x16xf32, #tpu.memory_space<vmem>>, %arg2: memref<16x32xf32, #tpu.memory_space<vmem>>, %arg3: memref<1x32xf32, #tpu.memory_space<vmem>>, %arg4: memref<32x32xf32, #tpu.memory_space<vmem>>, %arg5: memref<1x32xf32, #tpu.memory_space<vmem>>, %arg6: memref<32x32xf32, #tpu.memory_space<vmem>>, %arg7: memref<1x32xf32, #tpu.memory_space<vmem>>, %arg8: memref<32x1xf32, #tpu.memory_space<vmem>>, %arg9: memref<1x1xf32, #tpu.memory_space<vmem>>, %arg10: memref<8x1xf32, #tpu.memory_space<vmem>>) attributes {dimension_semantics = [#tpu.dimension_semantics<parallel>], iteration_bounds = array<i64: 1>, scalar_prefetch = 0 : i64, scratch_operands = 0 : i64, tpu.core_type = #tpu.core_type<tc>, window_params = [{transform_indices = @transform_0, window_bounds = array<i64: 8, 16>}, {pipeline_mode = #tpu.pipeline_mode<synchronous>, transform_indices = @transform_1, window_bounds = array<i64: 16, 32>}, {pipeline_mode = #tpu.pipeline_mode<synchronous>, transform_indices = @transform_2, window_bounds = array<i64: 1, 32>}, {pipeline_mode = #tpu.pipeline_mode<synchronous>, transform_indices = @transform_3, window_bounds = array<i64: 32, 32>}, {pipeline_mode = #tpu.pipeline_mode<synchronous>, transform_indices = @transform_4, window_bounds = array<i64: 1, 32>}, {pipeline_mode = #tpu.pipeline_mode<synchronous>, transform_indices = @transform_5, window_bounds = array<i64: 32, 32>}, {pipeline_mode = #tpu.pipeline_mode<synchronous>, transform_indices = @transform_6, window_bounds = array<i64: 1, 32>}, {pipeline_mode = #tpu.pipeline_mode<synchronous>, transform_indices = @transform_7, window_bounds = array<i64: 32, 1>}, {pipeline_mode = #tpu.pipeline_mode<synchronous>, transform_indices = @transform_8, window_bounds = array<i64: 1, 1>}, {transform_indices = @transform_9, window_bounds = array<i64: 8, 1>}]} {
    %c0 = arith.constant 0 : index
    %c0_0 = arith.constant 0 : index
    %0 = vector.load %arg1[%c0, %c0_0] : memref<8x16xf32, #tpu.memory_space<vmem>>, vector<8x16xf32>
    %c0_1 = arith.constant 0 : index
    %c0_2 = arith.constant 0 : index
    %1 = vector.load %arg2[%c0_1, %c0_2] : memref<16x32xf32, #tpu.memory_space<vmem>>, vector<16x32xf32>
    %c0_3 = arith.constant 0 : index
    %c0_4 = arith.constant 0 : index
    %2 = vector.load %arg3[%c0_3, %c0_4] : memref<1x32xf32, #tpu.memory_space<vmem>>, vector<1x32xf32>
    %cst = arith.constant dense<0.000000e+00> : vector<8x32xf32>
    %3 = tpu.matmul %0, %1, %cst {dimension_numbers = #tpu.dot_dimension_numbers<[1], [0], [0], [1], [0, 0, 1, 1], [], []>} : vector<8x16xf32>, vector<16x32xf32>, vector<8x32xf32> -> vector<8x32xf32>
    %4 = vector.broadcast %2 : vector<1x32xf32> to vector<8x32xf32>
    %5 = arith.addf %3, %4 : vector<8x32xf32>
    %cst_5 = arith.constant 0.000000e+00 : f32
    %6 = vector.broadcast %cst_5 : f32 to vector<8x32xf32>
    %7 = arith.maximumf %5, %6 : vector<8x32xf32>
    %c0_6 = arith.constant 0 : index
    %c0_7 = arith.constant 0 : index
    %8 = vector.load %arg4[%c0_6, %c0_7] : memref<32x32xf32, #tpu.memory_space<vmem>>, vector<32x32xf32>
    %c0_8 = arith.constant 0 : index
    %c0_9 = arith.constant 0 : index
    %9 = vector.load %arg5[%c0_8, %c0_9] : memref<1x32xf32, #tpu.memory_space<vmem>>, vector<1x32xf32>
    %cst_10 = arith.constant dense<0.000000e+00> : vector<8x32xf32>
    %10 = tpu.matmul %7, %8, %cst_10 {dimension_numbers = #tpu.dot_dimension_numbers<[1], [0], [0], [1], [0, 0, 1, 1], [], []>} : vector<8x32xf32>, vector<32x32xf32>, vector<8x32xf32> -> vector<8x32xf32>
    %11 = vector.broadcast %9 : vector<1x32xf32> to vector<8x32xf32>
    %12 = arith.addf %10, %11 : vector<8x32xf32>
    %cst_11 = arith.constant 0.000000e+00 : f32
    %13 = vector.broadcast %cst_11 : f32 to vector<8x32xf32>
    %14 = arith.maximumf %12, %13 : vector<8x32xf32>
    %c0_12 = arith.constant 0 : index
    %c0_13 = arith.constant 0 : index
    %15 = vector.load %arg6[%c0_12, %c0_13] : memref<32x32xf32, #tpu.memory_space<vmem>>, vector<32x32xf32>
    %c0_14 = arith.constant 0 : index
    %c0_15 = arith.constant 0 : index
    %16 = vector.load %arg7[%c0_14, %c0_15] : memref<1x32xf32, #tpu.memory_space<vmem>>, vector<1x32xf32>
    %cst_16 = arith.constant dense<0.000000e+00> : vector<8x32xf32>
    %17 = tpu.matmul %14, %15, %cst_16 {dimension_numbers = #tpu.dot_dimension_numbers<[1], [0], [0], [1], [0, 0, 1, 1], [], []>} : vector<8x32xf32>, vector<32x32xf32>, vector<8x32xf32> -> vector<8x32xf32>
    %18 = vector.broadcast %16 : vector<1x32xf32> to vector<8x32xf32>
    %19 = arith.addf %17, %18 : vector<8x32xf32>
    %cst_17 = arith.constant 0.000000e+00 : f32
    %20 = vector.broadcast %cst_17 : f32 to vector<8x32xf32>
    %21 = arith.maximumf %19, %20 : vector<8x32xf32>
    %c0_18 = arith.constant 0 : index
    %c0_19 = arith.constant 0 : index
    %22 = vector.load %arg8[%c0_18, %c0_19] : memref<32x1xf32, #tpu.memory_space<vmem>>, vector<32x1xf32>
    %c0_20 = arith.constant 0 : index
    %c0_21 = arith.constant 0 : index
    %23 = vector.load %arg9[%c0_20, %c0_21] : memref<1x1xf32, #tpu.memory_space<vmem>>, vector<1x1xf32>
    %cst_22 = arith.constant dense<0.000000e+00> : vector<8x1xf32>
    %24 = tpu.matmul %21, %22, %cst_22 {dimension_numbers = #tpu.dot_dimension_numbers<[1], [0], [0], [1], [0, 0, 1, 1], [], []>} : vector<8x32xf32>, vector<32x1xf32>, vector<8x1xf32> -> vector<8x1xf32>
    %25 = vector.broadcast %23 : vector<1x1xf32> to vector<8x1xf32>
    %26 = arith.addf %24, %25 : vector<8x1xf32>
    %c0_23 = arith.constant 0 : index
    %c0_24 = arith.constant 0 : index
    %27 = vector.load %arg10[%c0_23, %c0_24] : memref<8x1xf32, #tpu.memory_space<vmem>>, vector<8x1xf32>
    tpu.vector_store %arg10[%c0_23, %c0_24], %26 {strides = array<i32>} : memref<8x1xf32, #tpu.memory_space<vmem>>, vector<8x1xf32>,
    return
  }
  func.func @transform_0(%arg0: i32) -> (i32, i32) {
    %c0_i32 = arith.constant 0 : i32
    %c0_i32_0 = arith.constant 0 : i32
    return %arg0, %c0_i32 : i32, i32
  }
  func.func @transform_1(%arg0: i32) -> (i32, i32) {
    %c0_i32 = arith.constant 0 : i32
    %c0_i32_0 = arith.constant 0 : i32
    %c0_i32_1 = arith.constant 0 : i32
    return %c0_i32, %c0_i32_0 : i32, i32
  }
  func.func @transform_2(%arg0: i32) -> (i32, i32) {
    %c0_i32 = arith.constant 0 : i32
    %c0_i32_0 = arith.constant 0 : i32
    %c0_i32_1 = arith.constant 0 : i32
    return %c0_i32, %c0_i32_0 : i32, i32
  }
  func.func @transform_3(%arg0: i32) -> (i32, i32) {
    %c0_i32 = arith.constant 0 : i32
    %c0_i32_0 = arith.constant 0 : i32
    %c0_i32_1 = arith.constant 0 : i32
    return %c0_i32, %c0_i32_0 : i32, i32
  }
  func.func @transform_4(%arg0: i32) -> (i32, i32) {
    %c0_i32 = arith.constant 0 : i32
    %c0_i32_0 = arith.constant 0 : i32
    %c0_i32_1 = arith.constant 0 : i32
    return %c0_i32, %c0_i32_0 : i32, i32
  }
  func.func @transform_5(%arg0: i32) -> (i32, i32) {
    %c0_i32 = arith.constant 0 : i32
    %c0_i32_0 = arith.constant 0 : i32
    %c0_i32_1 = arith.constant 0 : i32
    return %c0_i32, %c0_i32_0 : i32, i32
  }
  func.func @transform_6(%arg0: i32) -> (i32, i32) {
    %c0_i32 = arith.constant 0 : i32
    %c0_i32_0 = arith.constant 0 : i32
    %c0_i32_1 = arith.constant 0 : i32
    return %c0_i32, %c0_i32_0 : i32, i32
  }
  func.func @transform_7(%arg0: i32) -> (i32, i32) {
    %c0_i32 = arith.constant 0 : i32
    %c0_i32_0 = arith.constant 0 : i32
    %c0_i32_1 = arith.constant 0 : i32
    return %c0_i32, %c0_i32_0 : i32, i32
  }
  func.func @transform_8(%arg0: i32) -> (i32, i32) {
    %c0_i32 = arith.constant 0 : i32
    %c0_i32_0 = arith.constant 0 : i32
    %c0_i32_1 = arith.constant 0 : i32
    return %c0_i32, %c0_i32_0 : i32, i32
  }
  func.func @transform_9(%arg0: i32) -> (i32, i32) {
    %c0_i32 = arith.constant 0 : i32
    %c0_i32_0 = arith.constant 0 : i32
    return %arg0, %c0_i32 : i32, i32
  }
}

</mosaic_0001>

<bundles_post_ra>
// kernel: relunet_forward.1
= control target key start
LH: loop header
LB: loop body
LE: loop exit
PB: predicated region body
PF: predicated region fallthrough
CT: control target
= control target key end

     0   :  { %s682_s0 = inlined_call_operand.vmem [shape: f32[8,16], index: 0, kind: input, shape index: {}]   ;;  %s683_s1 = inlined_call_operand.hbm [shape: f32[16,32], index: 1, kind: input, shape index: {}]   ;;  %s684_s2 = inlined_call_operand.vmem [shape: f32[1,32], index: 2, kind: input, shape index: {}]   ;;  %s685_s3 = inlined_call_operand.vmem [shape: f32[32,32], index: 3, kind: input, shape index: {}]   ;;  %s686_s4 = inlined_call_operand.vmem [shape: f32[1,32], index: 4, kind: input, shape index: {}]   ;;  %s687_s5 = inlined_call_operand.hbm [shape: f32[32,32], index: 5, kind: input, shape index: {}]   ;;  %s688_s6 = inlined_call_operand.vmem [shape: f32[1,32], index: 6, kind: input, shape index: {}]   ;;  %s689_s7 = inlined_call_operand.vmem [shape: f32[32,1], index: 7, kind: input, shape index: {}]   ;;  %s690_s8 = inlined_call_operand.<no memory space> [shape: f32[1,1], index: 8, kind: input, shape index: {}]   ;;  %s691_s9 = inlined_call_operand.vmem [shape: f32[8,1], index: 9, kind: output, shape index: {}]  }
   0x1   :  { %v14_v0 = vstv %s690_s8 }
   0x2   :  { %15 = vst [vmem:[#allocation2] sm:$0x1] %v14_v0 }
   0x3   :  { %16 = vsyncpa [#allocation4], 0 }
   0x4   :  { %17 = vsyncpa [#allocation6], 0  ;;  %s552_s11 = smov [#allocation3]   ;;  %s504_s15 = scalar_lea.hbm %s683_s1, 256 }
   0x5   :  { %s25_s12 = sshll.u32 %s552_s11, 4  ;;  %p505_p0 = scmp.ne.s32.totalorder %s683_s1, %s504_s15  ;;  %s26_s12 = int_to_ptr.vmem [resolvable:$true] %s25_s12 }
   0x6   :  { %p508_p1 = scmp.lt.u32.totalorder %s504_s15, %s683_s1 }
   0x8   :  { %p510_p2 = pnand %p508_p1, %p505_p0 }
   0xa   :  { %513 = shalt.err (!%p510_p2)
}
   0xb   :  { %s514_s8 = scalar_lea.vmem %s26_s12, 256  ;;  %p519_p4 = scmp.lt.s32.totalorder %s26_s12, %s26_s12 }
   0xc   :  { %p515_p3 = scmp.ne.s32.totalorder %s26_s12, %s514_s8  ;;  %p520_p5 = scmp.lt.s32.totalorder %s514_s8, %s514_s8 }
   0xe   :  { %p521_p6 = por %p520_p5, %p519_p4 }
  0x10   :  { %p522_p7 = pnand %p521_p6, %p515_p3 }
  0x12   :  { %525 = shalt.err (!%p522_p7)
}
  0x13   :  { %s553_s20 = smov 128   ;;  %s554_s21 = smov 8  }
  0x14   :  { %31 = dma.hbm_to_vmem [thread:$0]  %s683_s1, 256, %s26_s12, [#allocation4], %s553_s20, %s553_s20, %s554_s21  }
  0x15   :  { %s555_s24 = smov [#allocation5]   ;;  %s526_s28 = scalar_lea.hbm %s687_s5, 512 }
  0x16   :  { %s43_s25 = sshll.u32 %s555_s24, 4  ;;  %p527_p8 = scmp.ne.s32.totalorder %s687_s5, %s526_s28  ;;  %s44_s25 = int_to_ptr.vmem [resolvable:$true] %s43_s25 }
  0x17   :  { %p530_p9 = scmp.lt.u32.totalorder %s526_s28, %s687_s5 }
  0x19   :  { %p532_p10 = pnand %p530_p9, %p527_p8 }
  0x1b   :  { %535 = shalt.err (!%p532_p10)
}
  0x1c   :  { %s536_s13 = scalar_lea.vmem %s44_s25, 512  ;;  %p541_p12 = scmp.lt.s32.totalorder %s44_s25, %s44_s25 }
  0x1d   :  { %p537_p11 = scmp.ne.s32.totalorder %s44_s25, %s536_s13  ;;  %p542_p13 = scmp.lt.s32.totalorder %s536_s13, %s536_s13 }
  0x1f   :  { %p543_p0 = por %p542_p13, %p541_p12 }
  0x21   :  { %p544_p1 = pnand %p543_p0, %p537_p11 }
  0x23   :  { %547 = shalt.err (!%p544_p1)
}
  0x24   :  { %49 = dma.hbm_to_vmem [thread:$0]  %s687_s5, 512, %s44_s25, [#allocation6], %s553_s20, %s553_s20, %s554_s21  }
  0x25   :  { %548 = dma.done.wait [#allocation4], 256  }
  0x26   :  { %549 = vsyncadd [#allocation4], 4294967040 }
  0x27   :  { %550 = dma.done.wait [#allocation6], 512  }
  0x28   :  { %551 = vsyncadd [#allocation6], 4294966784  ;;  %v556_v1 = vmov 0.0|0.0   ;;  %vm557_vm0 = vmmov 0   ;;  %v558_v2 = vmov 0.0   ;;  %v63_v3 = vld [vmem:[#allocation3] sm:$0xff] }
  0x29   :  { %476 = vmatprep.subr.bf16.mxu0 %v556_v1  ;;  %440 = vmatprep.mubr.msk.f32.mxu0 %vm557_vm0, %v558_v2  ;;  %v64_v4 = vld [vmem:[#allocation3 + $0x8] sm:$0xff]  ;;  %v147_v6 = vld [vmem:[%s685_s3] sm:$0xff]  ;;  %vm72_vm1 = vcmask 130048   ;;  %v150_v11 = vld [vmem:[%s685_s3 + $0x18] sm:$0xff]  ;;  %vm158_vm2 = vcmask 261120   ;;  %vm402_vm3 = vcmask 7168  }
  0x2a   :  { %479 = vmatprep.subr.bf16.mxu1 %v556_v1  ;;  %451 = vmatprep.mubr.msk.f32.mxu1 %vm557_vm0, %v558_v2  ;;  %v477_v5 = vpack.c.bf16 %v64_v4, %v63_v3  ;;  %v148_v7 = vld [vmem:[%s685_s3 + $0x8] sm:$0xff]  ;;  %v62_v9 = vld [vmem:[%s682_s0] sm:$0xff]  ;;  %v149_v10 = vld [vmem:[%s685_s3 + $0x10] sm:$0xff] }
  0x2b   :  { %v480_v8 = vpack.c.bf16 %v148_v7, %v147_v6  ;;  %v483_v12 = vpack.c.bf16 %v150_v11, %v149_v10  ;;  %v233_v13 = vld [vmem:[#allocation5] sm:$0xff]  ;;  %v234_v14 = vld [vmem:[#allocation5 + $0x8] sm:$0xff]  ;;  %v235_v21 = vld [vmem:[#allocation5 + $0x10] sm:$0xff] }
  0x2c   :  { %478 = vmatpush3.bf16.msra.mxu0 %v477_v5  ;;  %v486_v15 = vpack.c.bf16 %v234_v14, %v233_v13  ;;  %v410_v16 = vld [vmem:[%s684_s2] ss:$0 sm:$0xff]  ;;  %v236_v22 = vld [vmem:[#allocation5 + $0x18] sm:$0xff]  ;;  %v321_v33 = vld [vmem:[%s689_s7 + $0x18] sm:$0xff] }
  0x2d   :  { %481 = vmatpush3.bf16.msra.mxu1 %v480_v8  ;;  %485 = vmatprep.subr.bf16.mxu0 %v556_v1  ;;  %v489_v23 = vpack.c.bf16 %v236_v22, %v235_v21  ;;  %v318_v24 = vld [vmem:[%s689_s7] sm:$0xff]  ;;  %v319_v25 = vld [vmem:[%s689_s7 + $0x8] sm:$0xff]  ;;  %v320_v32 = vld [vmem:[%s689_s7 + $0x10] sm:$0xff] }
  0x2e   :  { %482 = vmatprep.subr.bf16.mxu1 %v556_v1  ;;  %v492_v26 = vpack.c.bf16 %v319_v25, %v318_v24  ;;  %v412_v27 = vld [vmem:[%s686_s4] ss:$0 sm:$0xff]  ;;  %v495_v34 = vpack.c.bf16 %v321_v33, %v320_v32 }
  0x2f   :  { %441 = vmatmul.mubr.msk.f32.vlgmr.msra.gmra.mrb[0].mxu0 %vm72_vm1, %v62_v9  ;;  %v414_v35 = vld [vmem:[%s688_s6] ss:$0 sm:$0xff] }
  0x30   :  { %462 = vmatprep.mubr.msk.f32.mxu0 %vm557_vm0, %v558_v2  ;;  %487 = vmatpush3.bf16.msra.mxu0 %v486_v15  ;;  %v416_v40 = vld [vmem:[#allocation2] ss:$0 sm:$0xff] }
  0x31   :  { %484 = vmatpush3.bf16.msra.mxu1 %v483_v12  ;;  %488 = vmatprep.subr.bf16.mxu0 %v556_v1 }
  0x32   :  { %491 = vmatprep.subr.bf16.mxu1 %v556_v1 }
  0x34   :  { %490 = vmatpush3.bf16.msra.mxu0 %v489_v23 }
 0x102   :  { %v142_v17 = vpop.f32.mrb[0].mxu0 }
 0x103   :  { %v143_v18 = vadd.f32 %v410_v16, %v142_v17  ;;  %v442_v19 = vpop.f32.mrb[1].mxu0 }
 0x105   :  { %v146_v20 = vmax.f32 %v143_v18, 0.0 }
 0x107   :  { %452 = vmatmul.mubr.msk.f32.vlgmr.msra.gmra.mrb[0].mxu1 %vm158_vm2, %v146_v20 }
 0x108   :  { %473 = vmatprep.mubr.msk.f32.mxu1 %vm557_vm0, %v558_v2  ;;  %493 = vmatpush3.bf16.msra.mxu1 %v492_v26 }
 0x109   :  { %494 = vmatprep.subr.bf16.mxu1 %v556_v1 }
 0x10c   :  { %496 = vmatpush3.bf16.msra.mxu1 %v495_v34 }
 0x1da   :  { %v228_v28 = vpop.f32.mrb[0].mxu1 }
 0x1db   :  { %v229_v29 = vadd.f32 %v412_v27, %v228_v28  ;;  %v453_v30 = vpop.f32.mrb[1].mxu1 }
 0x1dd   :  { %v232_v31 = vmax.f32 %v229_v29, 0.0 }
 0x1df   :  { %463 = vmatmul.mubr.msk.f32.vlgmr.msra.gmra.mrb[2].mxu0 %vm158_vm2, %v232_v31 }
 0x2b2   :  { %v313_v36 = vpop.f32.mrb[2].mxu0 }
 0x2b3   :  { %v314_v37 = vadd.f32 %v414_v35, %v313_v36  ;;  %v464_v38 = vpop.f32.mrb[3].mxu0 }
 0x2b5   :  { %v317_v39 = vmax.f32 %v314_v37, 0.0 }
 0x2b7   :  { %474 = vmatmul.mubr.msk.f32.vlgmr.msra.gmra.mrb[2].mxu1 %vm158_vm2, %v317_v39 }
 0x38a   :  { %v398_v41 = vpop.f32.mrb[2].mxu1 }
 0x38b   :  { %v399_v42 = vadd.f32 %v416_v40, %v398_v41  ;;  %v475_v43 = vpop.f32.mrb[3].mxu1 }
 0x38d   :  { %403 = vst.msk [vmem:[%s691_s9] sm:$0xff] %vm402_vm3, %v399_v42 }
 0x38e   :  { %408 = vsyncpa [#allocation4], 1 }
 0x38f   :  { %409 = vsyncpa [#allocation6], 1 }

</bundles_post_ra>
